<compile_context>
chip_gen: v7x
topology: tpu7x:2x2x1
jax: 0.10.0
libtpu: 0.0.40
codegen_flags: <defaults>
</compile_context>

<pallas_src>
import math

import jax
import jax.numpy as jnp
from jax import lax
from jax.experimental import pallas as pl
from jax.experimental.pallas import tpu as pltpu

# ---------------- configuration (small shapes consistent with the module) ---
BATCH = 2
SEQ = 8
D_MODEL = 32
NUM_HEADS = 4
HEAD_DIM = D_MODEL // NUM_HEADS

N_TOK = BATCH * SEQ             # 16 token rows, ordered (b, s)
N_PACK = NUM_HEADS * N_TOK      # 64 packed rows, ordered (h, b, s)
NEG_INF = -1e30


# ---------------- Pallas kernel ---------------------------------------------
def mha_kernel(x_ref, w_ref, bqk_ref, bo_ref, frow_ref, mask_ref,
               out_ref, attn_ref):
    """Single-invocation fused multi-head attention.

    x_ref    : VMEM (3*N_TOK, D)      row-stacked [q; k; v] token rows
    w_ref    : VMEM (D, 2*D + H*D)    column-stacked [Wq | Wk | Wvo_0..Wvo_{H-1}]
    bqk_ref  : VMEM (1, 2*D)          [bq | bk]
    bo_ref   : VMEM (1, D)            (bo + bv @ Wo) * stability_factor
    frow_ref : VMEM (N_PACK, 1)       per-(h,b) score factor, packed row order
    mask_ref : VMEM (N_PACK, N_PACK)  precomputed block-diagonal additive mask
    out_ref  : VMEM (N_TOK, D)
    attn_ref : VMEM (N_PACK, N_PACK)  packed block-diagonal attention slab
    """
    D, H, HD, n = D_MODEL, NUM_HEADS, HEAD_DIM, N_TOK

    # ---- one row-stacked projection matmul (rows [q;k;v], cols [Wq|Wk|Wvo]) --
    r = jnp.dot(x_ref[...], w_ref[...], preferred_element_type=jnp.float32)

    qp = r[0:n, 0:D] + bqk_ref[:, 0:D]                 # (16, 32)  q @ Wq + bq
    kp = r[n:2 * n, D:2 * D] + bqk_ref[:, D:2 * D]     # (16, 32)  k @ Wk + bk
    vo = r[2 * n:3 * n, 2 * D:2 * D + H * D]           # (16, 128) [v@Wvo_h per head]

    # ---- pack heads along sublanes: rows ordered (h, b, s) ------------------
    qh = jnp.concatenate([qp[:, h * HD:(h + 1) * HD] for h in range(H)], axis=0)  # (64, 8)
    kh = jnp.concatenate([kp[:, h * HD:(h + 1) * HD] for h in range(H)], axis=0)  # (64, 8)
    voh = jnp.concatenate([vo[:, h * D:(h + 1) * D] for h in range(H)], axis=0)   # (64, 32)

    # ---- all score scalings folded into one per-row factor, applied to q ----
    qh = qh * frow_ref[...]

    # ---- packed score matmul (contract last axes -> no explicit .T) ---------
    s = lax.dot_general(qh, kh, (((1,), (1,)), ((), ())),
                        preferred_element_type=jnp.float32)       # (64, 64)
    s = s + mask_ref[...]          # precomputed additive block-diagonal mask

    # ---- softmax (stable); reciprocal on the EUP + one Newton refinement ----
    s_max = jnp.max(s, axis=-1, keepdims=True)
    e = jnp.exp(s - s_max)
    denom = jnp.sum(e, axis=-1, keepdims=True)
    inv = pl.reciprocal(denom, approx=True)
    inv = inv * (2.0 - denom * inv)                   # ~f32-accurate reciprocal
    attn = e * inv

    # TODO(synk): nn.Dropout(p=0.1) on attn omitted (inference / eval identity).

    attn_ref[...] = attn                              # single lane-dense store

    # ---- attn @ (V @ Wvo): per-head output contributions directly -----------
    contrib = jnp.dot(attn, voh, preferred_element_type=jnp.float32)   # (64, 32)

    # ---- sum the H row blocks + folded bias (stability already folded) ------
    out_ref[...] = (contrib[0:n, :] + contrib[n:2 * n, :]
                    + contrib[2 * n:3 * n, :] + contrib[3 * n:4 * n, :]) \
                   + bo_ref[...]


# ---------------- one-time parameter preparation ------------------------------
def prepare_mha_params(params):
    """Pack weights/biases/constants once; the per-call wrapper only touches
    activations. All score scalings and stability_factor are folded here."""
    D, H, HD, S = D_MODEL, NUM_HEADS, HEAD_DIM, SEQ

    stab = params["stability_factor"][0]
    wo_s = params["wo"] * stab                                          # (D, D)

    # Wvo_h = Wv[:, h] @ (Wo[h, :] * stab), stacked along columns -> (D, H*D)
    wvo = jnp.concatenate(
        [params["wv"][:, h * HD:(h + 1) * HD] @ wo_s[h * HD:(h + 1) * HD, :]
         for h in range(H)], axis=1)

    w_pack = jnp.concatenate([params["wq"], params["wk"], wvo], axis=1)  # (D, 2D+H*D)
    b_qk = jnp.concatenate([params["bq"], params["bk"]])[None, :]        # (1, 2D)
    # bv contribution through Wo folded into bo (attn rows sum to 1)
    bo_p = (params["bo"] * stab + params["bv"] @ wo_s)[None, :]          # (1, D)

    # constant block-diagonal additive mask for the packed (h,b,s) row order
    idx = jnp.arange(N_PACK)
    same_blk = (idx[:, None] // S) == (idx[None, :] // S)
    mask_add = jnp.where(same_blk, 0.0, NEG_INF).astype(jnp.float32)     # (64, 64)

    base = (HD ** -0.5) * params["attention_scale"][0]
    return {
        "w_pack": w_pack, "b_qk": b_qk, "bo_p": bo_p, "mask_add": mask_add,
        "fbase": jnp.asarray(base, jnp.float32),                         # scalar
        "fcoup": (base * params["phase_coupling"]).astype(jnp.float32),  # (H,)
    }


# ---------------- per-call wrapper (activation plumbing only) -----------------
def enhanced_mha_forward(q, k, v, prep, phase):
    """q, k, v: (B, S, D) f32; phase: (B,) f32; prep: output of prepare_mha_params.

    Returns (output (B, S, D), attention weights (B, H, S, S))."""
    B, S, D = q.shape
    H = NUM_HEADS
    n_tok = B * S
    n_pack = H * n_tok

    x_pack = jnp.concatenate(
        [q.reshape(n_tok, D), k.reshape(n_tok, D), v.reshape(n_tok, D)], axis=0)

    # per-(h, b) score factor: scale * attention_scale * (1 + pc[h]*sin(phase[b]))
    fac = prep["fbase"] + prep["fcoup"][:, None] * jnp.sin(phase)[None, :]   # (H, B)
    f_row = jnp.broadcast_to(fac[:, :, None], (H, B, S)).reshape(n_pack, 1)

    vmem = pl.BlockSpec(memory_space=pltpu.MemorySpace.VMEM)
    out2d, attn_packed = pl.pallas_call(
        mha_kernel,
        out_shape=(jax.ShapeDtypeStruct((n_tok, D), jnp.float32),
                   jax.ShapeDtypeStruct((n_pack, n_pack), jnp.float32)),
        in_specs=[vmem] * 6,
        out_specs=(vmem, vmem),
    )(x_pack, prep["w_pack"], prep["b_qk"], prep["bo_p"], f_row, prep["mask_add"])

    out = out2d.reshape(B, S, D)

    # vectorized diagonal-block extraction (no Python double loop of slices)
    full = attn_packed.reshape(H, B, S, H, B, S)
    d1 = jnp.diagonal(full, axis1=0, axis2=3)        # (B, S, B, S, H)
    d2 = jnp.diagonal(d1, axis1=0, axis2=2)          # (S, S, H, B)
    attn = jnp.transpose(d2, (3, 2, 0, 1))           # (B, H, S, S)
    return out, attn


# ---------------- pure-JAX reference (for verification) ----------------------
def reference_forward(q, k, v, params, phase):
    def lin(x, w, bias):
        return x @ w + bias
    B, S, D = q.shape
    qp = lin(q, params["wq"], params["bq"])
    kp = lin(k, params["wk"], params["bk"])
    vp = lin(v, params["wv"], params["bv"])

    def split(x):  # (B,S,D) -> (B,H,S,hd)
        return x.reshape(B, S, NUM_HEADS, HEAD_DIM).transpose(0, 2, 1, 3)

    qh, kh, vh = split(qp), split(kp), split(vp)
    scores = jnp.einsum("bhqd,bhkd->bhqk", qh, kh) * (HEAD_DIM ** -0.5) \
             * params["attention_scale"][0]
    phase_factor = jnp.sin(phase)[:, None, None, None]
    pc = params["phase_coupling"][None, :, None, None]
    scores = scores * (1.0 + pc * phase_factor)
    attn = jax.nn.softmax(scores, axis=-1)
    ctx = jnp.einsum("bhqk,bhkd->bhqd", attn, vh)
    ctx = ctx.transpose(0, 2, 1, 3).reshape(B, S, D)
    out = lin(ctx, params["wo"], params["bo"]) * params["stability_factor"][0]
    return out, attn


# ---------------- deterministic parameter init --------------------------------
def init_params(key):
    bound = 1.0 / math.sqrt(D_MODEL)
    keys = jax.random.split(key, 9)

    def u(k, shape):
        return jax.random.uniform(k, shape, jnp.float32, -bound, bound)

    params = {
        "wq": u(keys[0], (D_MODEL, D_MODEL)), "bq": u(keys[1], (D_MODEL,)),
        "wk": u(keys[2], (D_MODEL, D_MODEL)), "bk": u(keys[3], (D_MODEL,)),
        "wv": u(keys[4], (D_MODEL, D_MODEL)), "bv": u(keys[5], (D_MODEL,)),
        "wo": u(keys[6], (D_MODEL, D_MODEL)), "bo": u(keys[7], (D_MODEL,)),
        # module inits phase_coupling to zeros; use small nonzero values so the
        # modulation path is exercised, still deterministic.
        "phase_coupling": 0.1 * jax.random.normal(keys[8], (NUM_HEADS,), jnp.float32),
        "attention_scale": jnp.ones((1,), jnp.float32),
        "stability_factor": jnp.ones((1,), jnp.float32),
    }
    return params


# ---------------- main --------------------------------------------------------
if __name__ == "__main__":
    key = jax.random.PRNGKey(0)
    kq, kk, kv, kp, kw = jax.random.split(key, 5)

    q = jax.random.normal(kq, (BATCH, SEQ, D_MODEL), jnp.float32)
    k = jax.random.normal(kk, (BATCH, SEQ, D_MODEL), jnp.float32)
    v = jax.random.normal(kv, (BATCH, SEQ, D_MODEL), jnp.float32)
    phase = jax.random.normal(kp, (BATCH,), jnp.float32)

    params = init_params(kw)
    prep = jax.block_until_ready(prepare_mha_params(params))   # one-time packing

    forward = jax.jit(enhanced_mha_forward)
    out, attn = forward(q, k, v, prep, phase)
    out = jax.block_until_ready(out)
    attn = jax.block_until_ready(attn)

    ref_out, ref_attn = reference_forward(q, k, v, params, phase)

    assert out.shape == (BATCH, SEQ, D_MODEL)
    assert attn.shape == (BATCH, NUM_HEADS, SEQ, SEQ)
    assert jnp.allclose(out, ref_out, atol=1e-4, rtol=1e-4), "output mismatch"
    assert jnp.allclose(attn, ref_attn, atol=1e-4, rtol=1e-4), "attention mismatch"

    print("KERNEL_OK")
</pallas_src>

<mosaic_0001>
module attributes {stable_mosaic.version = 11 : i64} {
  func.func @mha_kernel(%arg0: memref<48x32xf32, #tpu.memory_space<vmem>>, %arg1: memref<32x192xf32, #tpu.memory_space<vmem>>, %arg2: memref<1x64xf32, #tpu.memory_space<vmem>>, %arg3: memref<1x32xf32, #tpu.memory_space<vmem>>, %arg4: memref<64x1xf32, #tpu.memory_space<vmem>>, %arg5: memref<64x64xf32, #tpu.memory_space<vmem>>, %arg6: memref<16x32xf32, #tpu.memory_space<vmem>>, %arg7: memref<64x64xf32, #tpu.memory_space<vmem>>) attributes {dimension_semantics = [], scalar_prefetch = 0 : i64, scratch_operands = 0 : i64, tpu.core_type = #tpu.core_type<tc>} {
    %c0 = arith.constant 0 : index
    %c0_0 = arith.constant 0 : index
    %0 = vector.load %arg0[%c0, %c0_0] : memref<48x32xf32, #tpu.memory_space<vmem>>, vector<48x32xf32>
    %c0_1 = arith.constant 0 : index
    %c0_2 = arith.constant 0 : index
    %1 = vector.load %arg1[%c0_1, %c0_2] : memref<32x192xf32, #tpu.memory_space<vmem>>, vector<32x192xf32>
    %cst = arith.constant dense<0.000000e+00> : vector<48x192xf32>
    %2 = tpu.matmul %0, %1, %cst {dimension_numbers = #tpu.dot_dimension_numbers<[1], [0], [0], [1], [0, 0, 1, 1], [], []>} : vector<48x32xf32>, vector<32x192xf32>, vector<48x192xf32> -> vector<48x192xf32>
    %3 = vector.extract_strided_slice %2 {offsets = [0, 0], sizes = [16, 32], strides = [1, 1]} : vector<48x192xf32> to vector<16x32xf32>
    %c0_3 = arith.constant 0 : index
    %c0_4 = arith.constant 0 : index
    %4 = vector.load %arg2[%c0_3, %c0_4] : memref<1x64xf32, #tpu.memory_space<vmem>>, vector<1x32xf32>
    %5 = vector.broadcast %4 : vector<1x32xf32> to vector<16x32xf32>
    %6 = arith.addf %3, %5 : vector<16x32xf32>
    %7 = vector.extract_strided_slice %2 {offsets = [16, 32], sizes = [16, 32], strides = [1, 1]} : vector<48x192xf32> to vector<16x32xf32>
    %c0_5 = arith.constant 0 : index
    %c32 = arith.constant 32 : index
    %8 = vector.load %arg2[%c0_5, %c32] : memref<1x64xf32, #tpu.memory_space<vmem>>, vector<1x32xf32>
    %9 = vector.broadcast %8 : vector<1x32xf32> to vector<16x32xf32>
    %10 = arith.addf %7, %9 : vector<16x32xf32>
    %11 = vector.extract_strided_slice %2 {offsets = [32, 64], sizes = [16, 128], strides = [1, 1]} : vector<48x192xf32> to vector<16x128xf32>
    %12 = vector.extract_strided_slice %6 {offsets = [0, 0], sizes = [16, 8], strides = [1, 1]} : vector<16x32xf32> to vector<16x8xf32>
    %13 = vector.extract_strided_slice %6 {offsets = [0, 8], sizes = [16, 8], strides = [1, 1]} : vector<16x32xf32> to vector<16x8xf32>
    %14 = vector.extract_strided_slice %6 {offsets = [0, 16], sizes = [16, 8], strides = [1, 1]} : vector<16x32xf32> to vector<16x8xf32>
    %15 = vector.extract_strided_slice %6 {offsets = [0, 24], sizes = [16, 8], strides = [1, 1]} : vector<16x32xf32> to vector<16x8xf32>
    %16 = tpu.concatenate %12, %13, %14, %15 in 0 : vector<16x8xf32>, vector<16x8xf32>, vector<16x8xf32>, vector<16x8xf32> -> vector<64x8xf32>
    %17 = vector.extract_strided_slice %10 {offsets = [0, 0], sizes = [16, 8], strides = [1, 1]} : vector<16x32xf32> to vector<16x8xf32>
    %18 = vector.extract_strided_slice %10 {offsets = [0, 8], sizes = [16, 8], strides = [1, 1]} : vector<16x32xf32> to vector<16x8xf32>
    %19 = vector.extract_strided_slice %10 {offsets = [0, 16], sizes = [16, 8], strides = [1, 1]} : vector<16x32xf32> to vector<16x8xf32>
    %20 = vector.extract_strided_slice %10 {offsets = [0, 24], sizes = [16, 8], strides = [1, 1]} : vector<16x32xf32> to vector<16x8xf32>
    %21 = tpu.concatenate %17, %18, %19, %20 in 0 : vector<16x8xf32>, vector<16x8xf32>, vector<16x8xf32>, vector<16x8xf32> -> vector<64x8xf32>
    %22 = vector.extract_strided_slice %11 {offsets = [0, 0], sizes = [16, 32], strides = [1, 1]} : vector<16x128xf32> to vector<16x32xf32>
    %23 = vector.extract_strided_slice %11 {offsets = [0, 32], sizes = [16, 32], strides = [1, 1]} : vector<16x128xf32> to vector<16x32xf32>
    %24 = vector.extract_strided_slice %11 {offsets = [0, 64], sizes = [16, 32], strides = [1, 1]} : vector<16x128xf32> to vector<16x32xf32>
    %25 = vector.extract_strided_slice %11 {offsets = [0, 96], sizes = [16, 32], strides = [1, 1]} : vector<16x128xf32> to vector<16x32xf32>
    %26 = tpu.concatenate %22, %23, %24, %25 in 0 : vector<16x32xf32>, vector<16x32xf32>, vector<16x32xf32>, vector<16x32xf32> -> vector<64x32xf32>
    %c0_6 = arith.constant 0 : index
    %c0_7 = arith.constant 0 : index
    %27 = vector.load %arg4[%c0_6, %c0_7] : memref<64x1xf32, #tpu.memory_space<vmem>>, vector<64x1xf32>
    %28 = vector.broadcast %27 : vector<64x1xf32> to vector<64x8xf32>
    %29 = arith.mulf %16, %28 : vector<64x8xf32>
    %cst_8 = arith.constant dense<0.000000e+00> : vector<64x64xf32>
    %30 = tpu.matmul %29, %21, %cst_8 {dimension_numbers = #tpu.dot_dimension_numbers<[1], [1], [0], [0], [0, 0, 1, 0], [], []>} : vector<64x8xf32>, vector<64x8xf32>, vector<64x64xf32> -> vector<64x64xf32>
    %c0_9 = arith.constant 0 : index
    %c0_10 = arith.constant 0 : index
    %31 = vector.load %arg5[%c0_9, %c0_10] : memref<64x64xf32, #tpu.memory_space<vmem>>, vector<64x64xf32>
    %32 = arith.addf %30, %31 : vector<64x64xf32>
    %cst_11 = arith.constant dense<0xFF800000> : vector<64xf32>
    %33 = vector.multi_reduction <maximumf>, %32, %cst_11 [1] : vector<64x64xf32> to vector<64xf32>
    %34 = vector.shape_cast %33 : vector<64xf32> to vector<64x1xf32>
    %35 = vector.broadcast %34 : vector<64x1xf32> to vector<64x64xf32>
    %36 = arith.subf %32, %35 : vector<64x64xf32>
    %37 = math.exp %36 : vector<64x64xf32>
    %cst_12 = arith.constant dense<0.000000e+00> : vector<64xf32>
    %38 = vector.multi_reduction <add>, %37, %cst_12 [1] : vector<64x64xf32> to vector<64xf32>
    %39 = vector.shape_cast %38 : vector<64xf32> to vector<64x1xf32>
    %40 = tpu.reciprocal %39 {approx = true} : vector<64x1xf32> -> vector<64x1xf32>
    %41 = arith.mulf %39, %40 : vector<64x1xf32>
    %cst_13 = arith.constant 2.000000e+00 : f32
    %42 = vector.broadcast %cst_13 : f32 to vector<64x1xf32>
    %43 = arith.subf %42, %41 : vector<64x1xf32>
    %44 = arith.mulf %40, %43 : vector<64x1xf32>
    %45 = vector.broadcast %44 : vector<64x1xf32> to vector<64x64xf32>
    %46 = arith.mulf %37, %45 : vector<64x64xf32>
    %c0_14 = arith.constant 0 : index
    %c0_15 = arith.constant 0 : index
    %47 = vector.load %arg7[%c0_14, %c0_15] : memref<64x64xf32, #tpu.memory_space<vmem>>, vector<64x64xf32>
    tpu.vector_store %arg7[%c0_14, %c0_15], %46 {strides = array<i32>} : memref<64x64xf32, #tpu.memory_space<vmem>>, vector<64x64xf32>,
    %cst_16 = arith.constant dense<0.000000e+00> : vector<64x32xf32>
    %48 = tpu.matmul %46, %26, %cst_16 {dimension_numbers = #tpu.dot_dimension_numbers<[1], [0], [0], [1], [0, 0, 1, 1], [], []>} : vector<64x64xf32>, vector<64x32xf32>, vector<64x32xf32> -> vector<64x32xf32>
    %49 = vector.extract_strided_slice %48 {offsets = [0, 0], sizes = [16, 32], strides = [1, 1]} : vector<64x32xf32> to vector<16x32xf32>
    %50 = vector.extract_strided_slice %48 {offsets = [16, 0], sizes = [16, 32], strides = [1, 1]} : vector<64x32xf32> to vector<16x32xf32>
    %51 = arith.addf %49, %50 : vector<16x32xf32>
    %52 = vector.extract_strided_slice %48 {offsets = [32, 0], sizes = [16, 32], strides = [1, 1]} : vector<64x32xf32> to vector<16x32xf32>
    %53 = arith.addf %51, %52 : vector<16x32xf32>
    %54 = vector.extract_strided_slice %48 {offsets = [48, 0], sizes = [16, 32], strides = [1, 1]} : vector<64x32xf32> to vector<16x32xf32>
    %55 = arith.addf %53, %54 : vector<16x32xf32>
    %c0_17 = arith.constant 0 : index
    %c0_18 = arith.constant 0 : index
    %56 = vector.load %arg3[%c0_17, %c0_18] : memref<1x32xf32, #tpu.memory_space<vmem>>, vector<1x32xf32>
    %57 = vector.broadcast %56 : vector<1x32xf32> to vector<16x32xf32>
    %58 = arith.addf %55, %57 : vector<16x32xf32>
    %c0_19 = arith.constant 0 : index
    %c0_20 = arith.constant 0 : index
    %59 = vector.load %arg6[%c0_19, %c0_20] : memref<16x32xf32, #tpu.memory_space<vmem>>, vector<16x32xf32>
    tpu.vector_store %arg6[%c0_19, %c0_20], %58 {strides = array<i32>} : memref<16x32xf32, #tpu.memory_space<vmem>>, vector<16x32xf32>,
    return
  }
}

</mosaic_0001>

<bundles_post_ra>
// kernel: sin.1
= control target key start
LH: loop header
LB: loop body
LE: loop exit
PB: predicated region body
PF: predicated region fallthrough
CT: control target
= control target key end

     0   :  { %v126_v12 = vmov 683565275   ;;  %v127_v14 = vmov 2475754826   ;;  %v128_v16 = vmov 2131351028   ;;  %s169_s0 = inlined_call_operand.vmem [shape: f32[2], index: 0, kind: input, shape index: {}]   ;;  %s170_s1 = inlined_call_operand.vmem [shape: f32[2], index: 1, kind: output, shape index: {}]  }
   0x1   :  { %v145_v0 = vld [vmem:[%s169_s0] sm:$0x1]  ;;  %v129_v18 = vmov 2102212464   ;;  %v130_v20 = vmov 920167782  }
   0x2   :  { %v6_v1 = vand.u32 2139095040, %v145_v0  ;;  %v3_v3 = vand.u32 2147483647, %v145_v0  ;;  %v131_v27 = vmov 1326507024   ;;  %vm5_vm7 = vcmp.lt.s32.totalorder %v145_v0, 0 }
   0x3   :  { %vm95_vm12 = vweird.f32 %v145_v0 }
   0x4   :  { %v7_v2 = vshrl.u32 %v6_v1, 23  ;;  %v10_v6 = vand.u32 8388607, %v3_v3  ;;  %vm4_vm8 = vcmp.le.f32.partialorder %v3_v3, 0.7853982 }
   0x6   :  { %v108_v4 = vadd.s32 4294967169, %v7_v2  ;;  %v11_v9 = vor.u32 8388608, %v10_v6 }
   0x8   :  { %v13_v5 = vadd.s32 1, %v108_v4  ;;  %v51_v29 = vshll.u32 %v11_v9, 8 }
   0xa   :  { %vm14_vm0 = vcmp.gt.s32.totalorder %v13_v5, 0 }
   0xb   :  { %v15_v7 = vsel %vm14_vm0, %v13_v5, 0 }
   0xc   :  { %v17_v8 = vand.u32 31, %v15_v7  ;;  %v16_v10 = vshrl.u32 %v15_v7, 5 }
   0xe   :  { %v18_v11 = vsub.s32 32, %v17_v8  ;;  %v20_v13 = vshll.u32 %v126_v12, %v17_v8  ;;  %v23_v15 = vshll.u32 %v127_v14, %v17_v8  ;;  %v26_v17 = vshll.u32 %v128_v16, %v17_v8 }
   0xf   :  { %v29_v19 = vshll.u32 %v129_v18, %v17_v8  ;;  %v32_v21 = vshll.u32 %v130_v20, %v17_v8  ;;  %vm35_vm1 = vcmp.lt.s32.totalorder %v16_v10, 1  ;;  %vm38_vm2 = vcmp.lt.s32.totalorder %v16_v10, 4 }
  0x10   :  { %v19_v22 = vshrl.u32 %v126_v12, %v18_v11  ;;  %v21_v23 = vshrl.u32 %v127_v14, %v18_v11  ;;  %v24_v24 = vshrl.u32 %v128_v16, %v18_v11  ;;  %v27_v25 = vshrl.u32 %v129_v18, %v18_v11 }
  0x11   :  { %v30_v26 = vshrl.u32 %v130_v20, %v18_v11  ;;  %v33_v28 = vshrl.u32 %v131_v27, %v18_v11  ;;  %vm36_vm3 = vcmp.lt.s32.totalorder %v16_v10, 2  ;;  %vm37_vm4 = vcmp.lt.s32.totalorder %v16_v10, 3 }
  0x12   :  { %v22_v30 = vor.u32 %v21_v23, %v20_v13  ;;  %v25_v31 = vor.u32 %v24_v24, %v23_v15  ;;  %v28_v32 = vor.u32 %v27_v25, %v26_v17 }
  0x13   :  { %v31_v33 = vor.u32 %v30_v26, %v29_v19  ;;  %v34_v34 = vor.u32 %v33_v28, %v32_v21 }
  0x14   :  { %v39_v35 = vsel %vm35_vm1, %v19_v22, %v22_v30  ;;  %v40_v36 = vsel %vm38_vm2, %v28_v32, 2102212464  ;;  %v43_v37 = vsel %vm35_vm1, %v22_v30, %v25_v31  ;;  %v47_v38 = vsel %vm35_vm1, %v25_v31, %v28_v32 }
  0x15   :  { %v41_v39 = vsel %vm37_vm4, %v25_v31, %v40_v36  ;;  %v44_v40 = vsel %vm38_vm2, %v31_v33, 920167782  ;;  %v48_v41 = vsel %vm38_vm2, %v34_v34, 1326507024 }
  0x16   :  { %v45_v42 = vsel %vm37_vm4, %v28_v32, %v44_v40  ;;  %v49_v43 = vsel %vm37_vm4, %v31_v33, %v48_v41  ;;  %v42_v44 = vsel %vm36_vm3, %v39_v35, %v41_v39 }
  0x17   :  { %v46_v45 = vsel %vm36_vm3, %v43_v37, %v45_v42  ;;  %v50_v46 = vsel %vm36_vm3, %v47_v38, %v49_v43  ;;  %v58_v51 = vmul.u32 %v51_v29, %v42_v44 }
  0x18   :  { %v151_v47 = vmul.u32.u64.low %v51_v29, %v50_v46  ;;  %v152_v48 = vmul.u32.u64.high %v51_v29, %v50_v46, %v151_v47  ;;  %v154_v49 = vmul.u32.u64.low %v51_v29, %v46_v45  ;;  %v155_v50 = vmul.u32.u64.high %v51_v29, %v46_v45, %v154_v49 }
  0x1a   :  { %vm60_vm5 = vc.u32 %v152_v48, %v154_v49  ;;  %v61_v52 = vadd.s32 1, %v155_v50  ;;  %v59_v63 = vadd.s32 %v154_v49, %v152_v48 }
  0x1c   :  { %v62_v53 = vsel %vm60_vm5, %v61_v52, %v155_v50 }
  0x1d   :  { %v63_v54 = vadd.s32 %v62_v53, %v58_v51 }
  0x1f   :  { %v64_v55 = vadd.s32 536870912, %v63_v54 }
  0x21   :  { %v65_v56 = vshrl.u32 %v64_v55, 30 }
  0x23   :  { %v66_v57 = vshll.u32 %v65_v56, 30  ;;  %v89_v13 = vsub.s32 4, %v65_v56 }
  0x25   :  { %v67_v58 = vsub.s32 %v63_v54, %v66_v57  ;;  %v90_v15 = vsel %vm5_vm7, %v89_v13, %v65_v56 }
  0x26   :  { %v92_v18 = vsel %vm4_vm8, 0, %v90_v15 }
  0x27   :  { %v69_v59 = vsub.s32 0, %v67_v58  ;;  %v96_v19 = vadd.s32 3, %v92_v18 }
  0x29   :  { %v109_v60 = vmin.u32 %v69_v59, %v67_v58  ;;  %v97_v20 = vand.u32 3, %v96_v19 }
  0x2b   :  { %v71_v61 = vclz %v109_v60  ;;  %vm102_vm9 = vcmp.eq.s32.totalorder %v97_v20, 2  ;;  %vm99_vm10 = vcmp.eq.s32.totalorder %v97_v20, 0  ;;  %vm98_vm11 = vcmp.lt.s32.totalorder %v97_v20, 2 }
  0x2d   :  { %v110_v62 = vadd.s32 4294967294, %v71_v61 }
  0x2f   :  { %vm111_vm6 = vcmp.lt.s32.totalorder %v110_v62, 0 }
  0x30   :  { %v74_v1 = vsel %vm111_vm6, 0, %v110_v62 }
  0x31   :  { %v75_v2 = vsub.s32 32, %v74_v1  ;;  %v76_v4 = vshll.u32 %v67_v58, %v74_v1  ;;  %v79_v5 = vsub.s32 4294967266, %v74_v1 }
  0x33   :  { %v77_v6 = vshrl.u32 %v59_v63, %v75_v2  ;;  %v80_v7 = vadd.s32 127, %v79_v5 }
  0x35   :  { %v78_v8 = vor.u32 %v77_v6, %v76_v4  ;;  %v81_v9 = vshll.u32 %v80_v7, 23 }
  0x37   :  { %v82_v10 = vor.u32 4788187, %v81_v9  ;;  %v85_v11 = vcvt.s32.f32 %v78_v8 }
  0x39   :  { %v83_v12 = vand.u32 2147483647, %v82_v10 }
  0x3b   :  { %v86_v14 = vmul.f32 %v85_v11, %v83_v12 }
  0x3d   :  { %v87_v3 = vxor.u32 2147483648, %v86_v14 }
  0x3f   :  { %v88_v16 = vsel %vm5_vm7, %v87_v3, %v86_v14 }
  0x40   :  { %v91_v17 = vsel %vm4_vm8, %v145_v0, %v88_v16 }
  0x41   :  { %122 = vcosq.f32 %v91_v17 }
  0x42   :  { %124 = vsinq.f32 %v91_v17 }
  0x4b   :  { %v123_v21 = vpop.eup %122 }
  0x4c   :  { %v125_v22 = vpop.eup %124  ;;  %v103_v23 = vxor.u32 2147483648, %v123_v21 }
  0x4d   :  { %v100_v24 = vxor.u32 2147483648, %v125_v22 }
  0x4e   :  { %v104_v0 = vsel %vm102_vm9, %v103_v23, %v125_v22 }
  0x4f   :  { %v101_v25 = vsel %vm99_vm10, %v123_v21, %v100_v24 }
  0x50   :  { %v105_v26 = vsel %vm98_vm11, %v101_v25, %v104_v0 }
  0x51   :  { %v106_v27 = vsel %vm95_vm12, nan, %v105_v26 }
  0x52   :  { %107 = vst [vmem:[%s170_s1] sm:$0x1] %v106_v27 }

// kernel: enhanced_mha_forward.1
= control target key start
LH: loop header
LB: loop body
LE: loop exit
PB: predicated region body
PF: predicated region fallthrough
CT: control target
= control target key end

     0   :  { %v1067_v7 = vmov 0.0   ;;  %s1398_s0 = inlined_call_operand.vmem [shape: f32[48,32], index: 0, kind: input, shape index: {}]   ;;  %s1399_s1 = inlined_call_operand.vmem [shape: f32[32,192], index: 1, kind: input, shape index: {}]   ;;  %s1400_s2 = inlined_call_operand.vmem [shape: f32[1,64], index: 2, kind: input, shape index: {}]   ;;  %s1401_s3 = inlined_call_operand.vmem [shape: f32[1,32], index: 3, kind: input, shape index: {}]   ;;  %s1402_s4 = inlined_call_operand.vmem [shape: f32[64,1], index: 4, kind: input, shape index: {}]   ;;  %s1403_s5 = inlined_call_operand.vmem [shape: f32[64,64], index: 5, kind: input, shape index: {}]   ;;  %s1404_s6 = inlined_call_operand.hbm [shape: f32[16,32], index: 6, kind: output, shape index: {0}]   ;;  %s1405_s7 = inlined_call_operand.vmem [shape: f32[64,64], index: 7, kind: output, shape index: {1}]  }
   0x1   :  { %v33_v0 = vld [vmem:[%s1399_s1 + $0x8] sm:$0xff]  ;;  %v35_v1 = vld [vmem:[%s1399_s1 + $0x18] sm:$0xff]  ;;  %v32_v2 = vld [vmem:[%s1399_s1] sm:$0xff]  ;;  %123 = vmatprep.mubr.f32.mxu0 %v1067_v7 }
   0x2   :  { %v874_v3 = vpack.c.bf16 %v35_v1, %v33_v0  ;;  %v34_v4 = vld [vmem:[%s1399_s1 + $0x10] sm:$0xff]  ;;  %v37_v5 = vld [vmem:[%s1399_s1 + $0x28] sm:$0xff]  ;;  %v39_v6 = vld [vmem:[%s1399_s1 + $0x38] sm:$0xff] }
   0x3   :  { %v876_v8 = vpack.c.bf16 %v34_v4, %v32_v2  ;;  %v878_v9 = vpack.c.bf16 %v39_v6, %v37_v5  ;;  %v36_v10 = vld [vmem:[%s1399_s1 + $0x20] sm:$0xff]  ;;  %v38_v11 = vld [vmem:[%s1399_s1 + $0x30] sm:$0xff] }
   0x4   :  { %875 = vmatprep.subr.bf16.mxu0 %v874_v3  ;;  %v880_v12 = vpack.c.bf16 %v38_v11, %v36_v10 }
   0x5   :  { %877 = vmatpush1.bf16.msra.mxu0 %v876_v8 }
   0x6   :  { %13 = vsyncpa [#allocation3], 0  ;;  %879 = vmatprep.subr.bf16.mxu0 %v878_v9  ;;  %v26_v13 = vld [vmem:[%s1398_s0] sm:$0xff]  ;;  %vm40_vm0 = vcmask 261120   ;;  %v27_v14 = vld [vmem:[%s1398_s0 + $0x8] sm:$0xff]  ;;  %v1068_v26 = vmov 0  }
   0x7   :  { %v28_v15 = vld [vmem:[%s1398_s0 + $0x10] sm:$0xff]  ;;  %v29_v16 = vld [vmem:[%s1398_s0 + $0x18] sm:$0xff]  ;;  %v760_v17 = vld [vmem:[%s1400_s2] ss:$0 sm:$0xff]  ;;  %969 = vset.pattern.permute.xlu0 %v1068_v26  ;;  %975 = vset.pattern.permute.xlu1 %v1068_v26  ;;  %s1069_s26 = smov 104   ;;  %s1070_s2 = smov 120  }
   0x8   :  { %s1071_s27 = smov 96   ;;  %s1072_s28 = smov 112   ;;  %v30_v32 = vld [vmem:[%s1398_s0 + $0x20] sm:$0xff]  ;;  %v31_v33 = vld [vmem:[%s1398_s0 + $0x28] sm:$0xff]  ;;  %vm297_vm1 = vcmask 64512   ;;  %v219_v43 = vld [vmem:[%s1402_s4 + $0x10] sm:$0xff] }
   0x9   :  { %881 = vmatpush1.bf16.msra.mxu0 %v880_v12  ;;  %vm1180_vm2 = vmpackc.low %vm297_vm1, %vm297_vm1  ;;  %v217_v42 = vld [vmem:[%s1402_s4] sm:$0xff]  ;;  %v218_v44 = vld [vmem:[%s1402_s4 + $0x8] sm:$0xff]  ;;  %vm443_vm3 = vcmask 523264   ;;  %s1074_s10 = smov 32   ;;  %s1075_s30 = smov [#allocation2]  }
   0xa   :  { %v220_v45 = vld [vmem:[%s1402_s4 + $0x18] sm:$0xff]  ;;  %v221_v46 = vld [vmem:[%s1402_s4 + $0x20] sm:$0xff]  ;;  %v222_v47 = vld [vmem:[%s1402_s4 + $0x28] sm:$0xff]  ;;  %s739_s8 = sshll.u32 %s1075_s30, 4  ;;  %s740_s8 = int_to_ptr.vmem [resolvable:$true] %s739_s8 }
   0xb   :  { %v223_v48 = vld [vmem:[%s1402_s4 + $0x30] sm:$0xff]  ;;  %v224_v49 = vld [vmem:[%s1402_s4 + $0x38] sm:$0xff]  ;;  %s1073_s4 = smov 64   ;;  %v274_v26 = vld [vmem:[%s1403_s5 + $0x8] sm:$0xff]  ;;  %s1043_s9 = scalar_lea.vmem %s740_s8, 256 }
   0xc   :  { %754 = vmatmul.mubr.msk.f32.vlgmr.msra.gmra.mrb[0].mxu0 %vm40_vm0, %v26_v13  ;;  %p1044_p0 = scmp.ne.s32.totalorder %s740_s8, %s1043_s9  ;;  %p1048_p1 = scmp.lt.s32.totalorder %s740_s8, %s740_s8 }
   0xd   :  { %128 = vmatprep.mubr.f32.mxu0 %v1067_v7  ;;  %p1049_p2 = scmp.lt.s32.totalorder %s1043_s9, %s1043_s9 }
   0xf   :  { %p1050_p3 = por %p1049_p2, %p1048_p1 }
  0x10   :  { %755 = vmatmul.mubr.msk.f32.gmra.mrb[2].mxu0 %vm40_vm0, %v27_v14 }
  0x11   :  { %133 = vmatprep.mubr.f32.mxu0 %v1067_v7  ;;  %p1051_p4 = pnand %p1050_p3, %p1044_p0 }
  0x14   :  { %756 = vmatmul.mubr.msk.f32.gmra.mrb[4].mxu0 %vm40_vm0, %v28_v15 }
  0x15   :  { %138 = vmatprep.mubr.f32.mxu0 %v1067_v7 }
  0x18   :  { %757 = vmatmul.mubr.msk.f32.gmra.mrb[6].mxu0 %vm40_vm0, %v29_v16 }
  0x19   :  { %143 = vmatprep.mubr.f32.mxu0 %v1067_v7 }
  0x1c   :  { %758 = vmatmul.mubr.msk.f32.gmra.mrb[8].mxu0 %vm40_vm0, %v30_v32 }
  0x1d   :  { %149 = vmatprep.mubr.f32.mxu0 %v1067_v7 }
  0x20   :  { %759 = vmatmul.mubr.msk.f32.gmra.mrb[10].mxu0 %vm40_vm0, %v31_v33 }
  0xdf   :  { %v125_v18 = vpop.f32.mrb[0].mxu0 }
  0xe0   :  { %v1161_v19 = vadd.f32 %v760_v17, %v125_v18  ;;  %v127_v20 = vpop.f32.mrb[1].mxu0 }
  0xe3   :  { %v130_v21 = vpop.f32.mrb[2].mxu0 }
  0xe4   :  { %v1163_v22 = vadd.f32 %v760_v17, %v130_v21  ;;  %v132_v23 = vpop.f32.mrb[3].mxu0 }
  0xe7   :  { %v135_v24 = vpop.f32.mrb[4].mxu0 }
  0xe8   :  { %v137_v25 = vpop.f32.mrb[5].mxu0  ;;  %v165_v28 = vadd.f32 %v760_v17, %v135_v24 }
  0xeb   :  { %v140_v27 = vpop.f32.mrb[6].mxu0 }
  0xec   :  { %v166_v29 = vadd.f32 %v760_v17, %v140_v27  ;;  %v142_v30 = vpop.f32.mrb[7].mxu0  ;;  %v273_v27 = vld [vmem:[%s1403_s5] sm:$0xff] }
  0xee   :  { %v949_v31 = vpack.i.bf16 %v166_v29, %v165_v28 }
  0xef   :  { %v145_v57 = vpop.f32.mrb[8].mxu0 }
  0xf0   :  { %950 = vrot.lane.b32.xlu1 %v949_v31, %s1069_s26  ;;  %940 = vrot.lane.b32.xlu0 %v949_v31, %s1070_s2  ;;  %v147_v59 = vpop.f32.mrb[9].mxu0 }
  0xf3   :  { %v151_v63 = vpop.f32.mrb[10].mxu0 }
  0xf4   :  { %955 = vrot.lane.b32.xlu1 %v949_v31, %s1071_s27  ;;  %945 = vrot.lane.b32.xlu0 %v949_v31, %s1072_s28  ;;  %v1232_v0 = vpack.i.bf16 %v151_v63, %v145_v57  ;;  %v153_v1 = vpop.f32.mrb[11].mxu0 }
  0xf5   :  { %v1234_v2 = vpack.i.bf16 %v153_v1, %v147_v59 }
 0x162   :  { %v951_v34 = vpop.permute.xlu1 %950  ;;  %v941_v35 = vpop.permute.xlu0 %940 }
 0x163   :  { %960 = vrot.lane.b32.xlu0 %v941_v35, %s1071_s27 }
 0x166   :  { %v956_v36 = vpop.permute.xlu1 %955  ;;  %v946_v37 = vpop.permute.xlu0 %945 }
 0x167   :  { %v958_v38 = vunpack.i.h.bf16 %v956_v36  ;;  %v957_v39 = vunpack.i.l.bf16 %v956_v36  ;;  %965 = vrot.lane.b32.xlu1 %v946_v37, %s1071_s27  ;;  %227 = vperm.xlu0 %969, %v217_v42   ;;  %v275_v36 = vld [vmem:[%s1403_s5 + $0x10] sm:$0xff] }
 0x169   :  { %v882_v41 = vpack.c.bf16 %v958_v38, %v957_v39 }
 0x16b   :  { %884 = vmatprep.subr.msk.bf16.mxu1 %vm1180_vm2, %v882_v41  ;;  %971 = vrot.lane.b32.xlu1 %v951_v34, %s1071_s27  ;;  %v276_v34 = vld [vmem:[%s1403_s5 + $0x18] sm:$0xff] }
 0x16c   :  { %887 = vmatpush3.bf16.xpose.msk.msra.mxu1 %vm1180_vm2, %v882_v41  ;;  %237 = vperm.xlu0 %969, %v219_v43   ;;  %v278_v41 = vld [vmem:[%s1403_s5 + $0x28] sm:$0xff] }
 0x16f   :  { %232 = vperm.xlu1 %975, %v218_v44  }
 0x170   :  { %169 = vrot.lane.b32.xlu0 %v1161_v19, %s1070_s2 }
 0x173   :  { %242 = vperm.xlu1 %975, %v220_v45  }
 0x174   :  { %247 = vperm.xlu0 %969, %v221_v46  }
 0x177   :  { %171 = vrot.lane.b32.xlu1 %v1163_v22, %s1070_s2 }
 0x178   :  { %175 = vrot.lane.b32.xlu0 %v1161_v19, %s1072_s28 }
 0x17b   :  { %252 = vperm.xlu1 %975, %v222_v47   ;;  %v280_v47 = vld [vmem:[%s1403_s5 + $0x38] sm:$0xff] }
 0x17c   :  { %257 = vperm.xlu0 %969, %v223_v48  }
 0x17f   :  { %177 = vrot.lane.b32.xlu1 %v1163_v22, %s1072_s28 }
 0x180   :  { %181 = vrot.lane.b32.xlu0 %v1161_v19, %s1069_s26 }
 0x183   :  { %262 = vperm.xlu1 %975, %v224_v49  }
 0x184   :  { %982 = vrot.lane.b32.xlu0 %v1234_v2, %s1073_s4 }
 0x187   :  { %183 = vrot.lane.b32.xlu1 %v1163_v22, %s1069_s26 }
 0x18b   :  { %977 = vrot.lane.b32.xlu1 %v1232_v0, %s1071_s27 }
 0x1d5   :  { %v961_v50 = vpop.permute.xlu0 %960 }
 0x1d6   :  { %v963_v51 = vunpack.i.h.bf16 %v961_v50  ;;  %v962_v52 = vunpack.i.l.bf16 %v961_v50 }
 0x1d8   :  { %v888_v53 = vpack.c.bf16 %v963_v51, %v962_v52 }
 0x1d9   :  { %v966_v54 = vpop.permute.xlu1 %965 }
 0x1da   :  { %v968_v55 = vunpack.i.h.bf16 %v966_v54  ;;  %v967_v56 = vunpack.i.l.bf16 %v966_v54  ;;  %890 = vmatprep.subr.msk.bf16.mxu1 %vm1180_vm2, %v888_v53 }
 0x1db   :  { %893 = vmatpush3.bf16.xpose.msk.msra.mxu1 %vm1180_vm2, %v888_v53  ;;  %v277_v53 = vld [vmem:[%s1403_s5 + $0x20] sm:$0xff] }
 0x1dc   :  { %v894_v58 = vpack.c.bf16 %v968_v55, %v967_v56  ;;  %v279_v55 = vld [vmem:[%s1403_s5 + $0x30] sm:$0xff] }
 0x1dd   :  { %v972_v60 = vpop.permute.xlu1 %971 }
 0x1de   :  { %v974_v61 = vunpack.i.h.bf16 %v972_v60  ;;  %v973_v62 = vunpack.i.l.bf16 %v972_v60  ;;  %896 = vmatprep.subr.msk.bf16.mxu1 %vm1180_vm2, %v894_v58 }
 0x1e0   :  { %v900_v3 = vpack.c.bf16 %v974_v61, %v973_v62 }
 0x1e3   :  { %899 = vmatpush3.bf16.xpose.msk.msra.mxu1 %vm1180_vm2, %v894_v58 }
 0x1e4   :  { %902 = vmatprep.subr.msk.bf16.mxu1 %vm1180_vm2, %v900_v3 }
 0x1e6   :  { %v228_v4 = vpop.permute.xlu0 %227 }
 0x1e7   :  { %v265_v5 = vmul.f32 %v228_v4, %v1161_v19 }
 0x1e9   :  { %834 = vmatprep.mubr.msk.f32.mxu1 %vm297_vm1, %v265_v5 }
 0x1eb   :  { %v238_v6 = vpop.permute.xlu0 %237  ;;  %905 = vmatpush3.bf16.xpose.msk.msra.mxu1 %vm1180_vm2, %v900_v3 }
 0x1ee   :  { %v233_v7 = vpop.permute.xlu1 %232 }
 0x1ef   :  { %v266_v8 = vmul.f32 %v233_v7, %v1163_v22  ;;  %v170_v9 = vpop.permute.xlu0 %169 }
 0x1f0   :  { %v267_v10 = vmul.f32 %v238_v6, %v170_v9 }
 0x1f2   :  { %v243_v11 = vpop.permute.xlu1 %242  ;;  %835 = vmatmul.mubr.msk.f32.vlgmr.msra.gmra.mrb[0].mxu1 %vm297_vm1, %v266_v8 }
 0x1f3   :  { %v248_v12 = vpop.permute.xlu0 %247  ;;  %837 = vmatprep.mubr.msk.f32.mxu1 %vm297_vm1, %v267_v10 }
 0x1f6   :  { %v172_v13 = vpop.permute.xlu1 %171 }
 0x1f7   :  { %v268_v14 = vmul.f32 %v243_v11, %v172_v13  ;;  %v176_v15 = vpop.permute.xlu0 %175 }
 0x1f8   :  { %v269_v16 = vmul.f32 %v248_v12, %v176_v15 }
 0x1f9   :  { %838 = vmatmul.mubr.msk.f32.gmra.mrb[2].mxu1 %vm297_vm1, %v268_v14 }
 0x1fa   :  { %v253_v17 = vpop.permute.xlu1 %252  ;;  %840 = vmatprep.mubr.msk.f32.mxu1 %vm297_vm1, %v269_v16 }
 0x1fb   :  { %v258_v18 = vpop.permute.xlu0 %257 }
 0x1fe   :  { %v178_v19 = vpop.permute.xlu1 %177 }
 0x1ff   :  { %v270_v20 = vmul.f32 %v253_v17, %v178_v19  ;;  %v182_v21 = vpop.permute.xlu0 %181 }
 0x200   :  { %v271_v22 = vmul.f32 %v258_v18, %v182_v21 }
 0x201   :  { %841 = vmatmul.mubr.msk.f32.gmra.mrb[4].mxu1 %vm297_vm1, %v270_v20 }
 0x202   :  { %v263_v23 = vpop.permute.xlu1 %262  ;;  %843 = vmatprep.mubr.msk.f32.mxu1 %vm297_vm1, %v271_v22 }
 0x203   :  { %v1295_v59 = vpop.permute.xlu0 %982 }
 0x206   :  { %v184_v24 = vpop.permute.xlu1 %183 }
 0x207   :  { %v272_v25 = vmul.f32 %v263_v23, %v184_v24 }
 0x209   :  { %844 = vmatmul.mubr.msk.f32.gmra.mrb[6].mxu1 %vm297_vm1, %v272_v25 }
 0x20a   :  { %v978_v52 = vpop.permute.xlu1 %977 }
 0x2c5   :  { %v836_v28 = vpop.f32.mrb[0].mxu1 }
 0x2c6   :  { %v410_v29 = vadd.f32 %v836_v28, %v274_v26  ;;  %v404_v30 = vpop.f32.mrb[1].mxu1 }
 0x2c7   :  { %v405_v31 = vadd.f32 %v404_v30, %v273_v27 }
 0x2c8   :  { %v447_v32 = vsel %vm443_vm3, %v410_v29, -inf }
 0x2c9   :  { %448 = vmax.xlane.f32.xlu1 %v447_v32  ;;  %v444_v33 = vsel %vm443_vm3, %v405_v31, -inf }
 0x2ca   :  { %445 = vmax.xlane.f32.xlu0 %v444_v33 }
 0x2cc   :  { %v839_v35 = vpop.f32.mrb[2].mxu1 }
 0x2cd   :  { %v420_v37 = vadd.f32 %v839_v35, %v276_v34  ;;  %v414_v38 = vpop.f32.mrb[3].mxu1 }
 0x2ce   :  { %v415_v39 = vadd.f32 %v414_v38, %v275_v36 }
 0x2cf   :  { %v453_v40 = vsel %vm443_vm3, %v420_v37, -inf }
 0x2d0   :  { %454 = vmax.xlane.f32.xlu0 %v453_v40  ;;  %v450_v42 = vsel %vm443_vm3, %v415_v39, -inf }
 0x2d4   :  { %v842_v43 = vpop.f32.mrb[4].mxu1  ;;  %451 = vmax.xlane.f32.xlu0 %v450_v42 }
 0x2d5   :  { %v430_v44 = vadd.f32 %v842_v43, %v278_v41  ;;  %v424_v45 = vpop.f32.mrb[5].mxu1 }
 0x2d6   :  { %v425_v54 = vadd.f32 %v424_v45, %v277_v53 }
 0x2d7   :  { %v459_v46 = vsel %vm443_vm3, %v430_v44, -inf }
 0x2d8   :  { %460 = vmax.xlane.f32.xlu0 %v459_v46  ;;  %v456_v57 = vsel %vm443_vm3, %v425_v54, -inf }
 0x2da   :  { %987 = vrot.lane.b32.xlu1 %v1234_v2, %s1074_s10 }
 0x2dc   :  { %v845_v48 = vpop.f32.mrb[6].mxu1 }
 0x2dd   :  { %v1280_v49 = vadd.f32 %v845_v48, %v280_v47  ;;  %v434_v50 = vpop.f32.mrb[7].mxu1 }
 0x2de   :  { %v435_v56 = vadd.f32 %v434_v50, %v279_v55 }
 0x2df   :  { %v465_v51 = vsel %vm443_vm3, %v1280_v49, -inf }
 0x2e0   :  { %466 = vmax.xlane.f32.xlu0 %v465_v51  ;;  %v462_v58 = vsel %vm443_vm3, %v435_v56, -inf }
 0x2f6   :  { %997 = vrot.lane.b32.xlu0 %v978_v52, %s1073_s4 }
 0x2fe   :  { %457 = vmax.xlane.f32.xlu1 %v456_v57 }
 0x302   :  { %463 = vmax.xlane.f32.xlu1 %v462_v58 }
 0x313   :  { %992 = vrot.lane.b32.xlu1 %v1232_v0, %s1073_s4 }
 0x356   :  { %v449_v60 = vpop.xlane.xlu1 %448 }
 0x357   :  { %v469_v61 = vsub.f32 %v410_v29, %v449_v60  ;;  %v446_v62 = vpop.xlane.xlu0 %445 }
 0x358   :  { %v468_v63 = vsub.f32 %v405_v31, %v446_v62 }
 0x359   :  { %v478_v1 = vmul.f32 1.442695, %v469_v61 }
 0x35a   :  { %v476_v2 = vmul.f32 1.442695, %v468_v63  ;;  %v988_v21 = vpop.permute.xlu1 %987 }
 0x35b   :  { %1011 = vpow2.f32 %v478_v1 }
 0x35c   :  { %1013 = vpow2.f32 %v476_v2 }
 0x35d   :  { %v455_v3 = vpop.xlane.xlu0 %454 }
 0x35e   :  { %v471_v4 = vsub.f32 %v420_v37, %v455_v3 }
 0x360   :  { %v482_v5 = vmul.f32 1.442695, %v471_v4 }
 0x361   :  { %v452_v6 = vpop.xlane.xlu0 %451 }
 0x362   :  { %1015 = vpow2.f32 %v482_v5  ;;  %v470_v7 = vsub.f32 %v415_v39, %v452_v6 }
 0x364   :  { %v480_v8 = vmul.f32 1.442695, %v470_v7 }
 0x365   :  { %v1297_v9 = vpop.eup %1011  ;;  %v461_v0 = vpop.xlane.xlu0 %460 }
 0x366   :  { %v1299_v10 = vpop.eup %1013  ;;  %1017 = vpow2.f32 %v480_v8  ;;  %v473_v11 = vsub.f32 %v430_v44, %v461_v0  ;;  %v495_v12 = vsel %vm443_vm3, %v1297_v9, 0.0 }
 0x367   :  { %496 = vadd.xlane.f32.xlu0 %v495_v12  ;;  %v492_v13 = vsel %vm443_vm3, %v1299_v10, 0.0 }
 0x368   :  { %v486_v14 = vmul.f32 1.442695, %v473_v11  ;;  %493 = vadd.xlane.f32.xlu1 %v492_v13 }
 0x36a   :  { %1019 = vpow2.f32 %v486_v14 }
 0x36c   :  { %v1305_v15 = vpop.eup %1015 }
 0x36d   :  { %v501_v16 = vsel %vm443_vm3, %v1305_v15, 0.0  ;;  %v467_v23 = vpop.xlane.xlu0 %466 }
 0x36e   :  { %502 = vadd.xlane.f32.xlu1 %v501_v16  ;;  %v475_v41 = vsub.f32 %v1280_v49, %v467_v23 }
 0x370   :  { %v1309_v17 = vpop.eup %1017  ;;  %v490_v42 = vmul.f32 1.442695, %v475_v41 }
 0x371   :  { %v498_v18 = vsel %vm443_vm3, %v1309_v17, 0.0  ;;  %v998_v27 = vpop.permute.xlu0 %997 }
 0x372   :  { %499 = vadd.xlane.f32.xlu0 %v498_v18  ;;  %v1000_v30 = vunpack.i.h.bf16 %v998_v27  ;;  %v999_v32 = vunpack.i.l.bf16 %v998_v27 }
 0x374   :  { %v1313_v19 = vpop.eup %1019  ;;  %v910_v36 = vpack.c.bf16 %v1000_v30, %v999_v32 }
 0x375   :  { %v507_v20 = vsel %vm443_vm3, %v1313_v19, 0.0 }
 0x376   :  { %508 = vadd.xlane.f32.xlu0 %v507_v20 }
 0x38b   :  { %v458_v22 = vpop.xlane.xlu1 %457 }
 0x38c   :  { %v472_v24 = vsub.f32 %v425_v54, %v458_v22 }
 0x38e   :  { %v484_v25 = vmul.f32 1.442695, %v472_v24 }
 0x38f   :  { %v464_v26 = vpop.xlane.xlu1 %463 }
 0x390   :  { %1021 = vpow2.f32 %v484_v25  ;;  %v474_v28 = vsub.f32 %v435_v56, %v464_v26 }
 0x392   :  { %v488_v29 = vmul.f32 1.442695, %v474_v28 }
 0x393   :  { %v993_v31 = vpop.permute.xlu1 %992 }
 0x394   :  { %1023 = vpow2.f32 %v488_v29  ;;  %v995_v33 = vunpack.i.h.bf16 %v993_v31  ;;  %v994_v34 = vunpack.i.l.bf16 %v993_v31 }
 0x395   :  { %1025 = vpow2.f32 %v490_v42 }
 0x396   :  { %v906_v35 = vpack.c.bf16 %v995_v33, %v994_v34 }
 0x398   :  { %907 = vmatprep.subr.bf16.mxu0 %v906_v35 }
 0x399   :  { %909 = vmatpush3.bf16.msra.mxu0 %v906_v35 }
 0x39a   :  { %v1317_v37 = vpop.eup %1021  ;;  %911 = vmatprep.subr.bf16.mxu0 %v910_v36 }
 0x39b   :  { %v504_v38 = vsel %vm443_vm3, %v1317_v37, 0.0 }
 0x39c   :  { %505 = vadd.xlane.f32.xlu0 %v504_v38 }
 0x39d   :  { %913 = vmatpush3.bf16.msra.mxu0 %v910_v36 }
 0x39e   :  { %v1321_v39 = vpop.eup %1023 }
 0x39f   :  { %v510_v40 = vsel %vm443_vm3, %v1321_v39, 0.0  ;;  %v1329_v43 = vpop.eup %1025 }
 0x3a0   :  { %511 = vadd.xlane.f32.xlu1 %v510_v40  ;;  %v513_v44 = vsel %vm443_vm3, %v1329_v43, 0.0 }
 0x3b1   :  { %1007 = vrot.lane.b32.xlu1 %v988_v21, %s1073_s4 }
 0x3b2   :  { %1002 = vrot.lane.b32.xlu0 %v1295_v59, %s1073_s4 }
 0x3d1   :  { %514 = vadd.xlane.f32.xlu0 %v513_v44 }
 0x3f4   :  { %v497_v45 = vpop.xlane.xlu0 %496 }
 0x3f5   :  { %1027 = vrcp.f32 %v497_v45  ;;  %v494_v46 = vpop.xlane.xlu1 %493 }
 0x3f6   :  { %1029 = vrcp.f32 %v494_v46 }
 0x3fb   :  { %v503_v47 = vpop.xlane.xlu1 %502 }
 0x3fc   :  { %1031 = vrcp.f32 %v503_v47 }
 0x3ff   :  { %v1028_v48 = vpop.eup %1027  ;;  %v500_v50 = vpop.xlane.xlu0 %499 }
 0x400   :  { %v1030_v51 = vpop.eup %1029  ;;  %v525_v52 = vmul.f32 %v1028_v48, %v497_v45  ;;  %1033 = vrcp.f32 %v500_v50 }
 0x401   :  { %v524_v49 = vmul.f32 %v1030_v51, %v494_v46 }
 0x402   :  { %v533_v53 = vsub.f32 2.0, %v525_v52 }
 0x403   :  { %v532_v54 = vsub.f32 2.0, %v524_v49  ;;  %v509_v55 = vpop.xlane.xlu0 %508 }
 0x404   :  { %v541_v56 = vmul.f32 %v1028_v48, %v533_v53  ;;  %1035 = vrcp.f32 %v509_v55 }
 0x405   :  { %v540_v57 = vmul.f32 %v1030_v51, %v532_v54 }
 0x406   :  { %v1032_v58 = vpop.eup %1031  ;;  %v549_v59 = vmul.f32 %v1297_v9, %v541_v56 }
 0x407   :  { %v548_v60 = vmul.f32 %v1299_v10, %v540_v57  ;;  %v527_v61 = vmul.f32 %v1032_v58, %v503_v47 }
 0x408   :  { %557 = vst.msk [vmem:[%s1405_s7 + $0x8] sm:$0xff] %vm443_vm3, %v549_v59 }
 0x409   :  { %556 = vst.msk [vmem:[%s1405_s7] sm:$0xff] %vm443_vm3, %v548_v60  ;;  %v535_v62 = vsub.f32 2.0, %v527_v61  ;;  %862 = vmatprep.mubr.msk.f32.mxu0 %vm443_vm3, %v548_v60 }
 0x40a   :  { %v1034_v63 = vpop.eup %1033 }
 0x40b   :  { %v543_v1 = vmul.f32 %v1032_v58, %v535_v62  ;;  %v526_v2 = vmul.f32 %v1034_v63, %v500_v50 }
 0x40d   :  { %v551_v3 = vmul.f32 %v1305_v15, %v543_v1  ;;  %v534_v4 = vsub.f32 2.0, %v526_v2 }
 0x40e   :  { %v1036_v5 = vpop.eup %1035 }
 0x40f   :  { %559 = vst.msk [vmem:[%s1405_s7 + $0x18] sm:$0xff] %vm443_vm3, %v551_v3  ;;  %v542_v6 = vmul.f32 %v1034_v63, %v534_v4  ;;  %v529_v7 = vmul.f32 %v1036_v5, %v509_v55 }
 0x411   :  { %v550_v8 = vmul.f32 %v1309_v17, %v542_v6  ;;  %v537_v9 = vsub.f32 2.0, %v529_v7 }
 0x413   :  { %558 = vst.msk [vmem:[%s1405_s7 + $0x10] sm:$0xff] %vm443_vm3, %v550_v8  ;;  %v545_v0 = vmul.f32 %v1036_v5, %v537_v9 }
 0x415   :  { %v553_v10 = vmul.f32 %v1313_v19, %v545_v0 }
 0x417   :  { %561 = vst.msk [vmem:[%s1405_s7 + $0x28] sm:$0xff] %vm443_vm3, %v553_v10 }
 0x429   :  { %v506_v11 = vpop.xlane.xlu0 %505 }
 0x42a   :  { %1037 = vrcp.f32 %v506_v11 }
 0x42d   :  { %v512_v12 = vpop.xlane.xlu1 %511  ;;  %v1003_v13 = vpop.permute.xlu0 %1002 }
 0x42e   :  { %1039 = vrcp.f32 %v512_v12  ;;  %v1005_v14 = vunpack.i.h.bf16 %v1003_v13  ;;  %v1004_v15 = vunpack.i.l.bf16 %v1003_v13 }
 0x430   :  { %v914_v16 = vpack.c.bf16 %v1005_v14, %v1004_v15 }
 0x431   :  { %v1008_v17 = vpop.permute.xlu1 %1007 }
 0x432   :  { %v1010_v18 = vunpack.i.h.bf16 %v1008_v17  ;;  %v1009_v20 = vunpack.i.l.bf16 %v1008_v17  ;;  %915 = vmatprep.subr.bf16.mxu0 %v914_v16 }
 0x433   :  { %917 = vmatpush3.bf16.msra.mxu0 %v914_v16 }
 0x434   :  { %v1038_v21 = vpop.eup %1037  ;;  %v918_v19 = vpack.c.bf16 %v1010_v18, %v1009_v20 }
 0x435   :  { %v528_v22 = vmul.f32 %v1038_v21, %v506_v11 }
 0x436   :  { %919 = vmatprep.subr.bf16.mxu0 %v918_v19 }
 0x437   :  { %v536_v23 = vsub.f32 2.0, %v528_v22  ;;  %921 = vmatpush3.bf16.msra.mxu0 %v918_v19 }
 0x438   :  { %v1040_v24 = vpop.eup %1039 }
 0x439   :  { %v544_v25 = vmul.f32 %v1038_v21, %v536_v23  ;;  %v530_v26 = vmul.f32 %v1040_v24, %v512_v12 }
 0x43a   :  { %863 = vmatmul.mubr.msk.f32.vlgmr.msra.gmra.mrb[12].mxu0 %vm443_vm3, %v549_v59 }
 0x43b   :  { %v552_v27 = vmul.f32 %v1317_v37, %v544_v25  ;;  %v538_v28 = vsub.f32 2.0, %v530_v26  ;;  %865 = vmatprep.mubr.msk.f32.mxu0 %vm443_vm3, %v550_v8  ;;  %v785_v37 = vld [vmem:[%s1401_s3] ss:$0 sm:$0xff] }
 0x43d   :  { %560 = vst.msk [vmem:[%s1405_s7 + $0x20] sm:$0xff] %vm443_vm3, %v552_v27  ;;  %v546_v29 = vmul.f32 %v1040_v24, %v538_v28 }
 0x43f   :  { %v554_v30 = vmul.f32 %v1321_v39, %v546_v29 }
 0x441   :  { %562 = vst.msk [vmem:[%s1405_s7 + $0x30] sm:$0xff] %vm443_vm3, %v554_v30 }
 0x442   :  { %866 = vmatmul.mubr.msk.f32.gmra.mrb[12].mxu0 %vm443_vm3, %v551_v3 }
 0x443   :  { %868 = vmatprep.mubr.msk.f32.mxu0 %vm443_vm3, %v552_v27 }
 0x44a   :  { %869 = vmatmul.mubr.msk.f32.gmra.mrb[12].mxu0 %vm443_vm3, %v553_v10 }
 0x44b   :  { %871 = vmatprep.mubr.msk.f32.mxu0 %vm443_vm3, %v554_v30 }
 0x45e   :  { %v515_v31 = vpop.xlane.xlu0 %514 }
 0x45f   :  { %1041 = vrcp.f32 %v515_v31 }
 0x469   :  { %v1042_v32 = vpop.eup %1041 }
 0x46a   :  { %v531_v33 = vmul.f32 %v1042_v32, %v515_v31 }
 0x46c   :  { %v539_v34 = vsub.f32 2.0, %v531_v33 }
 0x46e   :  { %v547_v35 = vmul.f32 %v1042_v32, %v539_v34 }
 0x470   :  { %v555_v36 = vmul.f32 %v1329_v43, %v547_v35 }
 0x472   :  { %563 = vst.msk [vmem:[%s1405_s7 + $0x38] sm:$0xff] %vm443_vm3, %v555_v36  ;;  %872 = vmatmul.mubr.msk.f32.gmra.mrb[12].mxu0 %vm443_vm3, %v555_v36 }
 0x545   :  { %v873_v38 = vpop.f32.mrb[12].mxu0 }
 0x546   :  { %v731_v39 = vadd.f32 %v873_v38, %v785_v37  ;;  %v708_v40 = vpop.f32.mrb[13].mxu0 }
 0x547   :  { %v730_v41 = vadd.f32 %v785_v37, %v708_v40 }
 0x548   :  { %733 = vst.msk [vmem:[#allocation2 + $0x8] sm:$0xff] %vm40_vm0, %v731_v39 }
 0x549   :  { %732 = vst.msk [vmem:[#allocation2] sm:$0xff] %vm40_vm0, %v730_v41 }
 0x54a   :  { %1054 = shalt.err (!%p1051_p4)
}
 0x54b   :  { %s1055_s10 = scalar_lea.hbm %s1404_s6, 256 }
 0x54c   :  { %p1056_p5 = scmp.ne.s32.totalorder %s1404_s6, %s1055_s10  ;;  %p1059_p6 = scmp.lt.u32.totalorder %s1055_s10, %s1404_s6 }
 0x54e   :  { %p1061_p7 = pnand %p1059_p6, %p1056_p5 }
 0x550   :  { %1064 = shalt.err (!%p1061_p7)
}
 0x551   :  { %s1076_s14 = smov 128   ;;  %s1077_s15 = smov 8  }
 0x552   :  { %745 = dma.vmem_to_hbm [thread:$0]  %s740_s8, 256, %s1404_s6, [#allocation3], %s1076_s14, %s1076_s14, %s1077_s15  }
 0x553   :  { %1065 = dma.done.wait [#allocation3], 256  }
 0x554   :  { %1066 = vsyncadd [#allocation3], 4294967040 }
 0x555   :  { %753 = vsyncpa [#allocation3], 1 }

</bundles_post_ra>
